<compile_context>
chip_gen: v7x
topology: tpu7x:2x2x1
jax: 0.10.0
libtpu: 0.0.40
codegen_flags: <defaults>
</compile_context>

<pallas_src>
import functools

import jax
import jax.numpy as jnp
from jax import lax
from jax.experimental import pallas as pl
from jax.experimental.pallas import tpu as pltpu

LANES = 128
SUBLANES = 8
ROW_TILE = SUBLANES * LANES        # 1024-element granularity for the reshape
MAX_BLOCK_ROWS = 2048              # 2048 x 128 x 4 B = 1 MiB per f32 input block


def _reduce_kernel(w_ref, x_ref, t_ref, o_ref, *, huber_c, block_rows,
                   total_rows, scalar_w):
    """Writes an (8,128) partial sum per grid block; final reduce happens in JAX."""
    i = pl.program_id(0)
    c = jnp.float32(huber_c)
    x = x_ref[...].astype(jnp.float32)
    t = t_ref[...].astype(jnp.float32)
    d = x - t
    elem = jnp.sqrt(d * d + c * c) - c
    if scalar_w:
        elem = elem * w_ref[0, 0]                       # scalar from SMEM
    else:
        elem = elem * w_ref[...].astype(jnp.float32)    # per-element weights
    # Mask rows that fall outside the real array (only the last grid block can
    # be partial; the select is free filler under the DMA-bound steady state).
    row_ids = i * block_rows + lax.broadcasted_iota(jnp.int32, elem.shape, 0)
    elem = jnp.where(row_ids < total_rows, elem, 0.0)
    # Fold sublane groups with plain VPU adds into one vreg-shaped (8,128) slab.
    # The reshape only regroups whole (8,128) tiles, so it is layout-free.
    o_ref[...] = jnp.sum(
        elem.reshape(block_rows // SUBLANES, SUBLANES, LANES), axis=0)


def _elem_kernel(w_ref, x_ref, t_ref, o_ref, *, huber_c, scalar_w):
    """Elementwise pseudo-Huber map (reduction='none')."""
    c = jnp.float32(huber_c)
    d = x_ref[...].astype(jnp.float32) - t_ref[...].astype(jnp.float32)
    out = jnp.sqrt(d * d + c * c) - c
    if scalar_w:
        out = out * w_ref[0, 0]
    else:
        out = out * w_ref[...].astype(jnp.float32)
    o_ref[...] = out.astype(o_ref.dtype)


def pseudo_huber_loss(x, target, weights=1.0, *, huber_c=1.0, reduction="mean"):
    assert x.shape == target.shape
    if reduction not in ("mean", "sum", "none"):
        raise ValueError(f"unknown reduction {reduction!r}")

    orig_shape = x.shape
    n = x.size

    w_arr = jnp.asarray(weights)
    scalar_w = (w_arr.size == 1)

    xf = x.reshape(-1)
    tf = target.reshape(-1)
    if scalar_w:
        w_operand = w_arr.astype(jnp.float32).reshape(1, 1)   # lives in SMEM
        wf = None
    else:
        # Broadcastable weight tensors are materialized once; per-element
        # weights pass through untouched.
        wf = jnp.broadcast_to(w_arr, orig_shape).reshape(-1)

    # Round the flat length up to a multiple of 1024 so rows % 8 == 0 and every
    # (block_rows, 128) tile is (8,128)-aligned.  Padded elements have x == t,
    # so sqrt(0 + c^2) - c == 0 exactly and they never affect a reduction.
    # TODO(synk): for flat sizes that are not multiples of 1024 this pad is a
    # full HBM copy; a bulk-kernel + JAX-tail split would avoid it.
    pad = (-n) % ROW_TILE
    if pad:
        xf = jnp.pad(xf, (0, pad))
        tf = jnp.pad(tf, (0, pad))
        if not scalar_w:
            wf = jnp.pad(wf, (0, pad))

    rows = (n + pad) // LANES
    block_rows = min(MAX_BLOCK_ROWS, rows)
    num_blocks = pl.cdiv(rows, block_rows)

    x2 = xf.reshape(rows, LANES)
    t2 = tf.reshape(rows, LANES)

    tile_spec = pl.BlockSpec((block_rows, LANES), lambda i: (i, 0))
    if scalar_w:
        w_spec = pl.BlockSpec(memory_space=pltpu.MemorySpace.SMEM)
    else:
        w_spec = tile_spec
        w_operand = wf.reshape(rows, LANES)

    compiler_params = pltpu.CompilerParams(
        dimension_semantics=("parallel",),     # megacore split of the blocks
        vmem_limit_bytes=32 << 20,             # safe on v5e/v6e/v7x, roomy for 1 MiB tiles
    )

    if reduction in ("mean", "sum"):
        kernel = functools.partial(
            _reduce_kernel, huber_c=float(huber_c), block_rows=block_rows,
            total_rows=rows, scalar_w=scalar_w)
        partials = pl.pallas_call(
            kernel,
            out_shape=jax.ShapeDtypeStruct((num_blocks * SUBLANES, LANES),
                                           jnp.float32),
            grid=(num_blocks,),
            in_specs=[w_spec, tile_spec, tile_spec],
            out_specs=pl.BlockSpec((SUBLANES, LANES), lambda i: (i, 0)),
            compiler_params=compiler_params,
        )(w_operand, x2, t2)
        total = jnp.sum(partials)
        if reduction == "mean":
            total = total / jnp.float32(n)
        return total.astype(x.dtype)

    else:  # 'none'
        kernel = functools.partial(
            _elem_kernel, huber_c=float(huber_c), scalar_w=scalar_w)
        out2 = pl.pallas_call(
            kernel,
            out_shape=jax.ShapeDtypeStruct((rows, LANES), x.dtype),
            grid=(num_blocks,),
            in_specs=[w_spec, tile_spec, tile_spec],
            out_specs=tile_spec,
            compiler_params=compiler_params,
        )(w_operand, x2, t2)
        return out2.reshape(-1)[:n].reshape(orig_shape)


if __name__ == "__main__":
    key = jax.random.PRNGKey(0)
    k1, k2, k3 = jax.random.split(key, 3)

    # Small NCHW-like shapes consistent with an image-space loss.
    shape = (2, 4, 16, 16)
    x = jax.random.normal(k1, shape, dtype=jnp.float32)
    t = jax.random.normal(k2, shape, dtype=jnp.float32)
    huber_c = 1.0

    base = jnp.sqrt((x - t) ** 2 + huber_c ** 2) - huber_c

    # Default forward: reduction='mean', scalar weights (SMEM path).
    loss = jax.block_until_ready(
        pseudo_huber_loss(x, t, 1.0, huber_c=huber_c, reduction="mean"))
    ref = jnp.mean(base)
    assert jnp.allclose(loss, ref, rtol=1e-5, atol=1e-5), (loss, ref)

    # 'sum'
    loss_sum = jax.block_until_ready(
        pseudo_huber_loss(x, t, 1.0, huber_c=huber_c, reduction="sum"))
    ref_sum = jnp.sum(base)
    assert jnp.allclose(loss_sum, ref_sum, rtol=1e-5, atol=1e-4), (loss_sum, ref_sum)

    # 'none'
    loss_none = jax.block_until_ready(
        pseudo_huber_loss(x, t, 1.0, huber_c=huber_c, reduction="none"))
    assert loss_none.shape == shape
    assert jnp.allclose(loss_none, base, rtol=1e-5, atol=1e-5)

    # Per-element weight tensor (VMEM weight-stream path).
    w = jax.random.uniform(k3, shape, dtype=jnp.float32)
    loss_w = jax.block_until_ready(
        pseudo_huber_loss(x, t, w, huber_c=huber_c, reduction="mean"))
    ref_w = jnp.mean(base * w)
    assert jnp.allclose(loss_w, ref_w, rtol=1e-5, atol=1e-5), (loss_w, ref_w)

    print("KERNEL_OK")
</pallas_src>

<mosaic_0001>
module attributes {stable_mosaic.version = 11 : i64} {
  func.func @_reduce_kernel(%arg0: i32, %arg1: memref<1x1xf32, #tpu.memory_space<smem>>, %arg2: memref<16x128xf32, #tpu.memory_space<vmem>>, %arg3: memref<16x128xf32, #tpu.memory_space<vmem>>, %arg4: memref<8x128xf32, #tpu.memory_space<vmem>>) attributes {dimension_semantics = [#tpu.dimension_semantics<parallel>], iteration_bounds = array<i64: 1>, scalar_prefetch = 0 : i64, scratch_operands = 0 : i64, tpu.core_type = #tpu.core_type<tc>, window_params = [{transform_indices = @transform_0, window_bounds = array<i64: 1, 1>}, {transform_indices = @transform_1, window_bounds = array<i64: 16, 128>}, {transform_indices = @transform_2, window_bounds = array<i64: 16, 128>}, {transform_indices = @transform_3, window_bounds = array<i64: 8, 128>}]} {
    %c0 = arith.constant 0 : index
    %c0_0 = arith.constant 0 : index
    %0 = vector.load %arg2[%c0, %c0_0] : memref<16x128xf32, #tpu.memory_space<vmem>>, vector<16x128xf32>
    %c0_1 = arith.constant 0 : index
    %c0_2 = arith.constant 0 : index
    %1 = vector.load %arg3[%c0_1, %c0_2] : memref<16x128xf32, #tpu.memory_space<vmem>>, vector<16x128xf32>
    %2 = arith.subf %0, %1 : vector<16x128xf32>
    %3 = arith.mulf %2, %2 : vector<16x128xf32>
    %cst = arith.constant 1.000000e+00 : f32
    %cst_3 = arith.constant 1.000000e+00 : f32
    %4 = arith.mulf %cst, %cst_3 : f32
    %5 = vector.broadcast %4 : f32 to vector<16x128xf32>
    %6 = arith.addf %3, %5 : vector<16x128xf32>
    %7 = math.sqrt %6 : vector<16x128xf32>
    %cst_4 = arith.constant 1.000000e+00 : f32
    %8 = vector.broadcast %cst_4 : f32 to vector<16x128xf32>
    %9 = arith.subf %7, %8 : vector<16x128xf32>
    %c0_5 = arith.constant 0 : index
    %c0_6 = arith.constant 0 : index
    %10 = memref.load %arg1[%c0_5, %c0_6] : memref<1x1xf32, #tpu.memory_space<smem>>
    %11 = vector.broadcast %10 : f32 to vector<16x128xf32>
    %12 = arith.mulf %9, %11 : vector<16x128xf32>
    %c16_i32 = arith.constant 16 : i32
    %13 = arith.muli %arg0, %c16_i32 : i32
    %14 = tpu.iota {dimensions = array<i32: 0>} : vector<16x128xi32>
    %15 = vector.broadcast %13 : i32 to vector<16x128xi32>
    %16 = arith.addi %15, %14 : vector<16x128xi32>
    %c16_i32_7 = arith.constant 16 : i32
    %17 = vector.broadcast %c16_i32_7 : i32 to vector<16x128xi32>
    %18 = arith.cmpi slt, %16, %17 : vector<16x128xi32>
    %cst_8 = arith.constant 0.000000e+00 : f32
    %19 = vector.broadcast %cst_8 : f32 to vector<16x128xf32>
    %20 = arith.select %18, %12, %19 : vector<16x128xi1>, vector<16x128xf32>
    %21 = vector.shape_cast %20 : vector<16x128xf32> to vector<2x8x128xf32>
    %cst_9 = arith.constant dense<0.000000e+00> : vector<8x128xf32>
    %22 = vector.multi_reduction <add>, %21, %cst_9 [0] : vector<2x8x128xf32> to vector<8x128xf32>
    %c0_10 = arith.constant 0 : index
    %c0_11 = arith.constant 0 : index
    %23 = vector.load %arg4[%c0_10, %c0_11] : memref<8x128xf32, #tpu.memory_space<vmem>>, vector<8x128xf32>
    tpu.vector_store %arg4[%c0_10, %c0_11], %22 {strides = array<i32>} : memref<8x128xf32, #tpu.memory_space<vmem>>, vector<8x128xf32>,
    return
  }
  func.func @transform_0(%arg0: i32) -> (i32, i32) {
    %c0_i32 = arith.constant 0 : i32
    %c0_i32_0 = arith.constant 0 : i32
    %c0_i32_1 = arith.constant 0 : i32
    return %c0_i32, %c0_i32_0 : i32, i32
  }
  func.func @transform_1(%arg0: i32) -> (i32, i32) {
    %c0_i32 = arith.constant 0 : i32
    %c0_i32_0 = arith.constant 0 : i32
    return %arg0, %c0_i32 : i32, i32
  }
  func.func @transform_2(%arg0: i32) -> (i32, i32) {
    %c0_i32 = arith.constant 0 : i32
    %c0_i32_0 = arith.constant 0 : i32
    return %arg0, %c0_i32 : i32, i32
  }
  func.func @transform_3(%arg0: i32) -> (i32, i32) {
    %c0_i32 = arith.constant 0 : i32
    %c0_i32_0 = arith.constant 0 : i32
    return %arg0, %c0_i32 : i32, i32
  }
}

</mosaic_0001>

<bundles_post_ra>
// kernel: tpu_custom_call.1
= control target key start
LH: loop header
LB: loop body
LE: loop exit
PB: predicated region body
PF: predicated region fallthrough
CT: control target
= control target key end

     0   :  { %9 = vsyncpa [#allocation4], 0  ;;  %s250_s0 = inlined_call_operand.<no memory space> [shape: f32[1,1], index: 0, kind: input, shape index: {}]   ;;  %s251_s1 = inlined_call_operand.hbm [shape: f32[16,128], index: 1, kind: input, shape index: {}]   ;;  %s252_s2 = inlined_call_operand.hbm [shape: f32[16,128], index: 2, kind: input, shape index: {}]   ;;  %s253_s3 = inlined_call_operand.hbm [shape: f32[8,128], index: 3, kind: output, shape index: {}]  }
   0x1   :  { %10 = vsyncpa [#allocation7], 0 }
   0x2   :  { %11 = vsyncpa [#allocation5], 0  ;;  %s186_s12 = smov [#allocation3]   ;;  %s114_s16 = scalar_lea.hbm %s251_s1, 256 }
   0x3   :  { %s19_s13 = sshll.u32 %s186_s12, 4  ;;  %p115_p0 = scmp.ne.s32.totalorder %s251_s1, %s114_s16  ;;  %s20_s13 = int_to_ptr.vmem [resolvable:$true] %s19_s13 }
   0x4   :  { %p118_p1 = scmp.lt.u32.totalorder %s114_s16, %s251_s1 }
   0x6   :  { %p120_p2 = pnand %p118_p1, %p115_p0 }
   0x8   :  { %123 = shalt.err (!%p120_p2)
}
   0x9   :  { %s124_s21 = scalar_lea.vmem %s20_s13, 256  ;;  %p129_p4 = scmp.lt.s32.totalorder %s20_s13, %s20_s13 }
   0xa   :  { %p125_p3 = scmp.ne.s32.totalorder %s20_s13, %s124_s21  ;;  %p130_p5 = scmp.lt.s32.totalorder %s124_s21, %s124_s21 }
   0xc   :  { %p131_p6 = por %p130_p5, %p129_p4 }
   0xe   :  { %p132_p7 = pnand %p131_p6, %p125_p3 }
  0x10   :  { %135 = shalt.err (!%p132_p7)
}
  0x11   :  { %s187_s22 = smov 128   ;;  %s188_s23 = smov 8  }
  0x12   :  { %25 = dma.hbm_to_vmem [thread:$0]  %s251_s1, 256, %s20_s13, [#allocation4], %s187_s22, %s187_s22, %s188_s23  }
  0x13   :  { %s189_s26 = smov [#allocation6]   ;;  %s136_s30 = scalar_lea.hbm %s252_s2, 256 }
  0x14   :  { %s31_s27 = sshll.u32 %s189_s26, 4  ;;  %p137_p8 = scmp.ne.s32.totalorder %s252_s2, %s136_s30  ;;  %s32_s27 = int_to_ptr.vmem [resolvable:$true] %s31_s27 }
  0x15   :  { %p140_p9 = scmp.lt.u32.totalorder %s136_s30, %s252_s2 }
  0x17   :  { %p142_p10 = pnand %p140_p9, %p137_p8 }
  0x19   :  { %145 = shalt.err (!%p142_p10)
}
  0x1a   :  { %s146_s8 = scalar_lea.vmem %s32_s27, 256  ;;  %p151_p12 = scmp.lt.s32.totalorder %s32_s27, %s32_s27 }
  0x1b   :  { %p147_p11 = scmp.ne.s32.totalorder %s32_s27, %s146_s8  ;;  %p152_p13 = scmp.lt.s32.totalorder %s146_s8, %s146_s8 }
  0x1d   :  { %p153_p0 = por %p152_p13, %p151_p12 }
  0x1f   :  { %p154_p1 = pnand %p153_p0, %p147_p11 }
  0x21   :  { %157 = shalt.err (!%p154_p1)
}
  0x22   :  { %37 = dma.hbm_to_vmem [thread:$0]  %s252_s2, 256, %s32_s27, [#allocation7], %s187_s22, %s187_s22, %s188_s23  }
  0x23   :  { %180 = dma.done.wait [#allocation4], 256  }
  0x24   :  { %181 = vsyncadd [#allocation4], 4294967040 }
  0x25   :  { %182 = dma.done.wait [#allocation7], 256  }
  0x26   :  { %183 = vsyncadd [#allocation7], 4294967040  ;;  %v44_v0 = vld [vmem:[#allocation3] sm:$0xff]  ;;  %v45_v1 = vld [vmem:[#allocation3 + $0x8] sm:$0xff]  ;;  %v71_v19 = vstv %s250_s0  ;;  %s190_s11 = smov [#allocation8]  }
  0x27   :  { %v46_v2 = vld [vmem:[#allocation6] sm:$0xff]  ;;  %v47_v3 = vld [vmem:[#allocation6 + $0x8] sm:$0xff]  ;;  %s93_s12 = sshll.u32 %s190_s11, 4  ;;  %s94_s12 = int_to_ptr.vmem [resolvable:$true] %s93_s12 }
  0x28   :  { %v48_v4 = vsub.f32 %v44_v0, %v46_v2  ;;  %v49_v5 = vsub.f32 %v45_v1, %v47_v3  ;;  %s158_s13 = scalar_lea.vmem %s94_s12, 128  ;;  %p163_p3 = scmp.lt.s32.totalorder %s94_s12, %s94_s12 }
  0x29   :  { %p159_p2 = scmp.ne.s32.totalorder %s94_s12, %s158_s13  ;;  %p164_p4 = scmp.lt.s32.totalorder %s158_s13, %s158_s13 }
  0x2a   :  { %v50_v6 = vmul.f32 %v48_v4, %v48_v4  ;;  %v51_v7 = vmul.f32 %v49_v5, %v49_v5 }
  0x2b   :  { %p165_p5 = por %p164_p4, %p163_p3 }
  0x2c   :  { %v52_v8 = vadd.f32 1.0, %v50_v6  ;;  %v53_v9 = vadd.f32 1.0, %v51_v7 }
  0x2d   :  { %p166_p6 = pnand %p165_p5, %p159_p2 }
  0x2e   :  { %110 = vrsqrt.f32 %v52_v8  ;;  %vm56_vm0 = vcmp.eq.f32.partialorder %v52_v8, inf  ;;  %v59_v11 = vand.u32 2147483648, %v52_v8  ;;  %vm58_vm1 = vcmp.eq.f32.partialorder %v52_v8, 0.0 }
  0x2f   :  { %112 = vrsqrt.f32 %v53_v9  ;;  %vm63_vm2 = vcmp.eq.f32.partialorder %v53_v9, inf  ;;  %v66_v14 = vand.u32 2147483648, %v53_v9  ;;  %vm65_vm3 = vcmp.eq.f32.partialorder %v53_v9, 0.0 }
  0x38   :  { %v111_v10 = vpop.eup %110 }
  0x39   :  { %v113_v12 = vpop.eup %112  ;;  %v55_v13 = vmul.f32 %v111_v10, %v52_v8 }
  0x3a   :  { %v62_v15 = vmul.f32 %v113_v12, %v53_v9 }
  0x3b   :  { %v57_v16 = vsel %vm56_vm0, %v52_v8, %v55_v13 }
  0x3c   :  { %v60_v17 = vsel %vm58_vm1, %v59_v11, %v57_v16  ;;  %v64_v18 = vsel %vm63_vm2, %v53_v9, %v62_v15 }
  0x3d   :  { %v67_v20 = vsel %vm65_vm3, %v66_v14, %v64_v18  ;;  %v103_v21 = vadd.f32 -1.0, %v60_v17 }
  0x3e   :  { %v104_v22 = vadd.f32 -1.0, %v67_v20 }
  0x3f   :  { %v72_v23 = vmul.f32 %v103_v21, %v71_v19 }
  0x40   :  { %v73_v24 = vmul.f32 %v104_v22, %v71_v19 }
  0x42   :  { %v85_v25 = vadd.f32 %v73_v24, %v72_v23 }
  0x44   :  { %86 = vst [vmem:[#allocation8] sm:$0xff] %v85_v25 }
  0x45   :  { %169 = shalt.err (!%p166_p6)
}
  0x46   :  { %s170_s0 = scalar_lea.hbm %s253_s3, 128 }
  0x47   :  { %p171_p7 = scmp.ne.s32.totalorder %s253_s3, %s170_s0  ;;  %p174_p8 = scmp.lt.u32.totalorder %s170_s0, %s253_s3 }
  0x49   :  { %p176_p9 = pnand %p174_p8, %p171_p7 }
  0x4b   :  { %179 = shalt.err (!%p176_p9)
}
  0x4c   :  { %96 = dma.vmem_to_hbm [thread:$0]  %s94_s12, 128, %s253_s3, [#allocation5]  }
  0x4d   :  { %184 = dma.done.wait [#allocation5], 128  }
  0x4e   :  { %185 = vsyncadd [#allocation5], 4294967168 }
  0x4f   :  { %100 = vsyncpa [#allocation4], 1 }
  0x50   :  { %101 = vsyncpa [#allocation7], 1 }
  0x51   :  { %102 = vsyncpa [#allocation5], 1 }

</bundles_post_ra>
